<compile_context>
chip_gen: v7x
topology: tpu7x:2x2x1
jax: 0.10.0
libtpu: 0.0.40
codegen_flags: <defaults>
</compile_context>

<pallas_src>
import functools

import jax
import jax.numpy as jnp
from jax.experimental import pallas as pl
from jax.experimental.pallas import tpu as pltpu

C_COEFF = 0.85
EPS = 1e-6


def _round_up(x, m):
    return ((x + m - 1) // m) * m


def _vmem_capacity_bytes():
    """Per-core VMEM capacity; conservative fallback if the query is unavailable."""
    try:
        cap = getattr(pltpu.get_tpu_info(), "vmem_capacity_bytes", None)
        if cap:
            return int(cap)
    except Exception:
        pass
    return 64 * 1024 * 1024  # v7x per-TC capacity (smallest current generation)


def _gcn_kernel(x_ref, adj_ref, w_ref, diag_ref, o_ref, *, inv_n):
    # x_ref:    (bb, n_lane, in_pad)  compute dtype
    # adj_ref:  (bb, n_sub,  n_lane)  compute dtype
    # w_ref:    (in_pad, o_pad)       compute dtype  (constant index_map -> resident)
    # diag_ref: (1, n_sub, o_pad)     f32 hoisted eye mask (resident)
    # o_ref:    (bb, n_sub, o_pad)    out dtype
    bb, n_lane, in_pad = x_ref.shape
    o_pad = w_ref.shape[1]

    # XW as one sublane-dense MXU matmul: (bb*n_lane, in_pad) @ (in_pad, o_pad),
    # f32 accumulation.
    xw = jnp.dot(x_ref[...].reshape(bb * n_lane, in_pad), w_ref[...],
                 preferred_element_type=jnp.float32)
    xw = xw.reshape(bb, n_lane, o_pad)

    # Batched adj @ XW on the MXU, f32 accumulation.
    axw = jnp.einsum("bnm,bmo->bno", adj_ref[...], xw.astype(adj_ref.dtype),
                     preferred_element_type=jnp.float32)

    # eye(N) + c*AXW: the hoisted diagonal mask is 1.0 only on the true
    # (unpadded) diagonal, so padded rows/cols stay exactly zero. Single add,
    # no per-step iota/compare/select.
    i_caxw = C_COEFF * axw + diag_ref[...]
    y_relu = jnp.maximum(i_caxw, 0.0)

    # Padding-safe column mean over the node axis: padded rows are exactly zero,
    # so the sum over padded rows equals the true-row sum; divide by the true N.
    # Division via EUP approximate reciprocal (free VLIW slot).
    col_mean = jnp.sum(y_relu, axis=1, keepdims=True) * inv_n + EPS
    y_norm = y_relu * pl.reciprocal(col_mean, approx=True)

    # PyTorch softplus (beta=1, threshold=20). Keep the clamp: both branches of
    # the where are evaluated, and exp without the min() would overflow to inf.
    sp = jnp.where(y_norm > 20.0, y_norm,
                   jnp.log1p(jnp.exp(jnp.minimum(y_norm, 20.0))))

    o_ref[...] = sp.astype(o_ref.dtype)


def _choose_block(B, n_sub, n_lane, in_pad, o_pad, in_bytes, out_bytes, budget):
    """Pick (bb, grid_len) from the VMEM budget; no divisibility requirement on B."""
    # Per-batch-element VMEM cost: double-buffered I/O blocks plus the f32
    # intermediates the compiler keeps live (xw + ~3x axw/relu/norm values).
    per_bb = (2 * (n_lane * in_pad + n_sub * n_lane) * in_bytes   # x + adj blocks
              + 2 * n_sub * o_pad * out_bytes                     # output block
              + (n_lane * o_pad + 3 * n_sub * o_pad) * 4)         # f32 intermediates
    fixed = 2 * in_pad * o_pad * in_bytes + 2 * n_sub * o_pad * 4  # W + diag (resident)

    bb = max(1, (budget - fixed) // per_bb)
    if B >= 2:
        # >= 2 grid steps: gives the pipeline something to overlap and lets the
        # "parallel" batch axis shard across v7x's two TensorCores.
        grid_len = max(2, (B + bb - 1) // bb)
    else:
        grid_len = 1
    bb = (B + grid_len - 1) // grid_len  # rebalance -> minimal batch padding
    return int(bb), int(grid_len)


@functools.partial(jax.jit, static_argnames=("compute_dtype", "out_dtype"))
def gcn_forward(x, adj, w, *, compute_dtype=jnp.bfloat16, out_dtype=jnp.float32):
    B, N, in_dim = x.shape
    out_dim = w.shape[1]
    assert adj.shape == (B, N, N)
    # The eye(N) addition in the PyTorch module requires out_dim == N.
    assert out_dim == N, "GCN forward adds eye(N); out_dim must equal N"

    in_bytes = jnp.dtype(compute_dtype).itemsize
    out_bytes = jnp.dtype(out_dtype).itemsize
    sub_mult = 16 if in_bytes == 2 else 8

    # Lane dims -> multiple of 128 (lane-dense stores, full MXU tiles);
    # node/row dim -> multiple of 8/16 (sublane only).
    n_lane = _round_up(N, 128)        # adj last dim == XW row dim (contraction)
    n_sub = _round_up(N, sub_mult)    # adj row dim == output row dim
    in_pad = _round_up(in_dim, 128)
    o_pad = _round_up(out_dim, 128)

    # Generation-aware VMEM budgets: ~48/96 MiB on 128-MiB chips (v5e/v6e),
    # ~24/48 MiB on 64-MiB v7x.
    capacity = _vmem_capacity_bytes()
    budget = min(3 * capacity // 8, 48 * 1024 * 1024)
    vmem_limit = min(3 * capacity // 4, 96 * 1024 * 1024)

    bb, grid_len = _choose_block(B, n_sub, n_lane, in_pad, o_pad,
                                 in_bytes, out_bytes, budget)
    b_pad = bb * grid_len

    # Zero-pad at the boundary (also casts matmul inputs to compute_dtype —
    # bf16 halves HBM traffic of the dominant adj stream; epilogue stays f32).
    cd = compute_dtype
    xp = jnp.pad(x.astype(cd),
                 ((0, b_pad - B), (0, n_lane - N), (0, in_pad - in_dim)))
    adjp = jnp.pad(adj.astype(cd),
                   ((0, b_pad - B), (0, n_sub - N), (0, n_lane - N)))
    wp = jnp.pad(w.astype(cd), ((0, in_pad - in_dim), (0, o_pad - out_dim)))
    # Hoisted diagonal mask: 1.0 only on the true diagonal, zero in padding.
    diag = jnp.pad(jnp.eye(N, dtype=jnp.float32),
                   ((0, n_sub - N), (0, o_pad - out_dim)))[None]  # (1, n_sub, o_pad)

    cost = pl.CostEstimate(
        flops=b_pad * (2 * n_lane * in_pad * o_pad + 2 * n_sub * n_lane * o_pad),
        transcendentals=2 * b_pad * n_sub * o_pad,
        bytes_accessed=(xp.size + adjp.size + wp.size) * in_bytes
                       + diag.size * 4 + b_pad * n_sub * o_pad * out_bytes,
    )

    out_padded = pl.pallas_call(
        functools.partial(_gcn_kernel, inv_n=1.0 / N),
        out_shape=jax.ShapeDtypeStruct((b_pad, n_sub, o_pad), out_dtype),
        grid_spec=pl.GridSpec(
            grid=(grid_len,),
            in_specs=[
                pl.BlockSpec((bb, n_lane, in_pad), lambda b: (b, 0, 0)),
                pl.BlockSpec((bb, n_sub, n_lane), lambda b: (b, 0, 0)),
                pl.BlockSpec((in_pad, o_pad), lambda b: (0, 0)),
                pl.BlockSpec((1, n_sub, o_pad), lambda b: (0, 0, 0)),
            ],
            out_specs=pl.BlockSpec((bb, n_sub, o_pad), lambda b: (b, 0, 0)),
        ),
        compiler_params=pltpu.CompilerParams(
            dimension_semantics=("parallel",),
            vmem_limit_bytes=vmem_limit,
        ),
        cost_estimate=cost,
    )(xp, adjp, wp, diag)

    # Slice away lane/sublane/batch padding.
    return out_padded[:B, :N, :out_dim]


def gcn_reference(x, adj, w, compute_dtype=jnp.float32):
    """Pure-JAX reference mirroring the PyTorch forward (matmuls in compute_dtype,
    f32 accumulation and epilogue — matches the kernel's numerics)."""
    cd = compute_dtype
    n = adj.shape[-1]
    xw = jnp.einsum("bni,io->bno", x.astype(cd), w.astype(cd),
                    preferred_element_type=jnp.float32)
    axw = jnp.einsum("bnm,bmo->bno", adj.astype(cd), xw.astype(cd),
                     preferred_element_type=jnp.float32)
    i_caxw = jnp.eye(n, dtype=jnp.float32) + C_COEFF * axw
    y_relu = jax.nn.relu(i_caxw)
    col_mean = jnp.mean(y_relu, axis=-2, keepdims=True) + EPS
    y_norm = y_relu / col_mean
    return jnp.where(y_norm > 20.0, y_norm,
                     jnp.log1p(jnp.exp(jnp.minimum(y_norm, 20.0))))


if __name__ == "__main__":
    key = jax.random.PRNGKey(0)
    k_x, k_adj, k_w = jax.random.split(key, 3)

    # Small shapes consistent with the module: eye(N) addition forces out_dim == N.
    B, N = 2, 16
    in_dim, out_dim = N, N

    x = jax.random.normal(k_x, (B, N, in_dim), dtype=jnp.float32)
    adj = jax.random.uniform(k_adj, (B, N, N), dtype=jnp.float32)

    # Xavier-uniform init for the kernel parameter (deterministic via PRNGKey).
    limit = (6.0 / (in_dim + out_dim)) ** 0.5
    w = jax.random.uniform(k_w, (in_dim, out_dim), dtype=jnp.float32,
                           minval=-limit, maxval=limit)

    # f32 path: numerically mirrors the PyTorch forward (tolerance covers the
    # EUP approximate reciprocal).
    out_f32 = jax.block_until_ready(gcn_forward(x, adj, w, compute_dtype=jnp.float32))
    ref_f32 = gcn_reference(x, adj, w, jnp.float32)
    assert out_f32.shape == (B, N, out_dim)
    assert jnp.allclose(out_f32, ref_f32, rtol=2e-2, atol=2e-2), "f32 mismatch vs reference"

    # bf16 matmul path (default fast path): bf16 MXU inputs, f32 epilogue/output.
    out_bf16 = jax.block_until_ready(gcn_forward(x, adj, w, compute_dtype=jnp.bfloat16))
    ref_bf16 = gcn_reference(x, adj, w, jnp.bfloat16)
    assert out_bf16.shape == (B, N, out_dim)
    assert jnp.allclose(out_bf16, ref_bf16, rtol=2e-2, atol=2e-2), "bf16 mismatch vs reference"

    print("KERNEL_OK")
</pallas_src>

<mosaic_0001>
module attributes {stable_mosaic.version = 11 : i64} {
  func.func @_gcn_kernel(%arg0: i32, %arg1: memref<1x128x128xf32, #tpu.memory_space<vmem>>, %arg2: memref<1x16x128xf32, #tpu.memory_space<vmem>>, %arg3: memref<128x128xf32, #tpu.memory_space<vmem>>, %arg4: memref<1x16x128xf32, #tpu.memory_space<vmem>>, %arg5: memref<1x16x128xf32, #tpu.memory_space<vmem>>) attributes {dimension_semantics = [#tpu.dimension_semantics<parallel>], iteration_bounds = array<i64: 2>, scalar_prefetch = 0 : i64, scratch_operands = 0 : i64, tpu.core_type = #tpu.core_type<tc>, window_params = [{transform_indices = @transform_0, window_bounds = array<i64: 1, 128, 128>}, {transform_indices = @transform_1, window_bounds = array<i64: 1, 16, 128>}, {pipeline_mode = #tpu.pipeline_mode<synchronous>, transform_indices = @transform_2, window_bounds = array<i64: 128, 128>}, {pipeline_mode = #tpu.pipeline_mode<synchronous>, transform_indices = @transform_3, window_bounds = array<i64: 1, 16, 128>}, {transform_indices = @transform_4, window_bounds = array<i64: 1, 16, 128>}]} {
    %c0 = arith.constant 0 : index
    %c0_0 = arith.constant 0 : index
    %c0_1 = arith.constant 0 : index
    %0 = vector.load %arg1[%c0, %c0_0, %c0_1] : memref<1x128x128xf32, #tpu.memory_space<vmem>>, vector<1x128x128xf32>
    %1 = vector.shape_cast %0 : vector<1x128x128xf32> to vector<128x128xf32>
    %c0_2 = arith.constant 0 : index
    %c0_3 = arith.constant 0 : index
    %2 = vector.load %arg3[%c0_2, %c0_3] : memref<128x128xf32, #tpu.memory_space<vmem>>, vector<128x128xf32>
    %cst = arith.constant dense<0.000000e+00> : vector<128x128xf32>
    %3 = tpu.matmul %1, %2, %cst {dimension_numbers = #tpu.dot_dimension_numbers<[1], [0], [0], [1], [0, 0, 1, 1], [], []>} : vector<128x128xf32>, vector<128x128xf32>, vector<128x128xf32> -> vector<128x128xf32>
    %4 = vector.shape_cast %3 : vector<128x128xf32> to vector<1x128x128xf32>
    %c0_4 = arith.constant 0 : index
    %c0_5 = arith.constant 0 : index
    %c0_6 = arith.constant 0 : index
    %5 = vector.load %arg2[%c0_4, %c0_5, %c0_6] : memref<1x16x128xf32, #tpu.memory_space<vmem>>, vector<1x16x128xf32>
    "tpu.trace_start"() <{level = 10 : i32, message = "bnm,bmo->bno"}> : () -> ()
    %cst_7 = arith.constant dense<0.000000e+00> : vector<1x16x128xf32>
    %6 = tpu.matmul %5, %4, %cst_7 {dimension_numbers = #tpu.dot_dimension_numbers<[2], [1], [1], [2], [0, 0, 0, 1, 1, 2], [0], [0]>} : vector<1x16x128xf32>, vector<1x128x128xf32>, vector<1x16x128xf32> -> vector<1x16x128xf32>
    "tpu.trace_stop"() : () -> ()
    %cst_8 = arith.constant 8.500000e-01 : f32
    %7 = vector.broadcast %cst_8 : f32 to vector<1x16x128xf32>
    %8 = arith.mulf %7, %6 : vector<1x16x128xf32>
    %c0_9 = arith.constant 0 : index
    %c0_10 = arith.constant 0 : index
    %c0_11 = arith.constant 0 : index
    %9 = vector.load %arg4[%c0_9, %c0_10, %c0_11] : memref<1x16x128xf32, #tpu.memory_space<vmem>>, vector<1x16x128xf32>
    %10 = arith.addf %8, %9 : vector<1x16x128xf32>
    %cst_12 = arith.constant 0.000000e+00 : f32
    %11 = vector.broadcast %cst_12 : f32 to vector<1x16x128xf32>
    %12 = arith.maximumf %10, %11 : vector<1x16x128xf32>
    %cst_13 = arith.constant dense<0.000000e+00> : vector<1x128xf32>
    %13 = vector.multi_reduction <add>, %12, %cst_13 [1] : vector<1x16x128xf32> to vector<1x128xf32>
    %14 = vector.shape_cast %13 : vector<1x128xf32> to vector<1x1x128xf32>
    %cst_14 = arith.constant 6.250000e-02 : f32
    %15 = vector.broadcast %cst_14 : f32 to vector<1x1x128xf32>
    %16 = arith.mulf %14, %15 : vector<1x1x128xf32>
    %cst_15 = arith.constant 9.99999997E-7 : f32
    %17 = vector.broadcast %cst_15 : f32 to vector<1x1x128xf32>
    %18 = arith.addf %16, %17 : vector<1x1x128xf32>
    %19 = tpu.reciprocal %18 {approx = true} : vector<1x1x128xf32> -> vector<1x1x128xf32>
    %20 = vector.broadcast %19 : vector<1x1x128xf32> to vector<1x16x128xf32>
    %21 = arith.mulf %12, %20 : vector<1x16x128xf32>
    %cst_16 = arith.constant 2.000000e+01 : f32
    %22 = vector.broadcast %cst_16 : f32 to vector<1x16x128xf32>
    %23 = arith.cmpf ogt, %21, %22 : vector<1x16x128xf32>
    %cst_17 = arith.constant 2.000000e+01 : f32
    %24 = vector.broadcast %cst_17 : f32 to vector<1x16x128xf32>
    %25 = arith.minimumf %21, %24 : vector<1x16x128xf32>
    %26 = math.exp %25 : vector<1x16x128xf32>
    %27 = math.log1p %26 : vector<1x16x128xf32>
    %28 = arith.select %23, %21, %27 : vector<1x16x128xi1>, vector<1x16x128xf32>
    %c0_18 = arith.constant 0 : index
    %c0_19 = arith.constant 0 : index
    %c0_20 = arith.constant 0 : index
    %29 = vector.load %arg5[%c0_18, %c0_19, %c0_20] : memref<1x16x128xf32, #tpu.memory_space<vmem>>, vector<1x16x128xf32>
    tpu.vector_store %arg5[%c0_18, %c0_19, %c0_20], %28 {strides = array<i32>} : memref<1x16x128xf32, #tpu.memory_space<vmem>>, vector<1x16x128xf32>,
    return
  }
  func.func @transform_0(%arg0: i32) -> (i32, i32, i32) {
    %c0_i32 = arith.constant 0 : i32
    %c0_i32_0 = arith.constant 0 : i32
    %c0_i32_1 = arith.constant 0 : i32
    return %arg0, %c0_i32, %c0_i32_0 : i32, i32, i32
  }
  func.func @transform_1(%arg0: i32) -> (i32, i32, i32) {
    %c0_i32 = arith.constant 0 : i32
    %c0_i32_0 = arith.constant 0 : i32
    %c0_i32_1 = arith.constant 0 : i32
    return %arg0, %c0_i32, %c0_i32_0 : i32, i32, i32
  }
  func.func @transform_2(%arg0: i32) -> (i32, i32) {
    %c0_i32 = arith.constant 0 : i32
    %c0_i32_0 = arith.constant 0 : i32
    %c0_i32_1 = arith.constant 0 : i32
    return %c0_i32, %c0_i32_0 : i32, i32
  }
  func.func @transform_3(%arg0: i32) -> (i32, i32, i32) {
    %c0_i32 = arith.constant 0 : i32
    %c0_i32_0 = arith.constant 0 : i32
    %c0_i32_1 = arith.constant 0 : i32
    %c0_i32_2 = arith.constant 0 : i32
    return %c0_i32, %c0_i32_0, %c0_i32_1 : i32, i32, i32
  }
  func.func @transform_4(%arg0: i32) -> (i32, i32, i32) {
    %c0_i32 = arith.constant 0 : i32
    %c0_i32_0 = arith.constant 0 : i32
    %c0_i32_1 = arith.constant 0 : i32
    return %arg0, %c0_i32, %c0_i32_0 : i32, i32, i32
  }
}

</mosaic_0001>

<bundles_post_ra>
// kernel: gcn_forward.1
= control target key start
LH: loop header
LB: loop body
LE: loop exit
PB: predicated region body
PF: predicated region fallthrough
CT: control target
= control target key end

     0   :  { %9 = vsyncpa [#allocation3], 0  ;;  %s1163_s0 = inlined_call_operand.vmem [shape: f32[2,128,128], index: 0, kind: input, shape index: {}]   ;;  %s1164_s1 = inlined_call_operand.vmem [shape: f32[2,16,128], index: 1, kind: input, shape index: {}]   ;;  %s1165_s2 = inlined_call_operand.vmem [shape: f32[128,128], index: 2, kind: input, shape index: {}]   ;;  %s1166_s3 = inlined_call_operand.vmem [shape: f32[1,16,128], index: 3, kind: input, shape index: {}]   ;;  %s1167_s4 = inlined_call_operand.hbm [shape: f32[2,16,128], index: 4, kind: output, shape index: {}]  }
   0x1   :  { %11 = vsyncpa [#allocation3 + $0x1], 0  ;;  %s973_s15 = smov 0   ;;  %s975_s16 = smov 0  }
   0x2   :  { %s977_s17 = smov 0   ;;  %s979_s18 = smov 0  }
   0x3 LB: > { %s994_s19 = sadd.s32 4294967295, %s943_s18   ;;  %s608_s20 = sadd.s32 4294967294, %s943_s18   ;;  %s943_s18 = sphi %s979_s18, %s1173_s18   ;;  %s939_s17 = sphi %s977_s17, %s1172_s17   ;;  %s935_s16 = sphi %s975_s16, %s1171_s16   ;;  %s931_s15 = sphi %s973_s15, %s1170_s15  }
   0x4   : > { %s998_s21 = sadd.s32 1, %s943_s18   ;;  %s118_s22 = sadd.s32 1, %s939_s17 }
   0x5   : > { %s115_s23 = ssub.s32 %s943_s18, %s998_s21  ;;  %p128_p0 = scmp.ne.s32.totalorder %s939_s17, %s935_s16 }
   0x6   : > { %p116_p1 = scmp.eq.s32.totalorder %s115_s23, 0  ;;  %p129_p2 = scmp.eq.s32.totalorder %s994_s19, 1 }
   0x7   : > { %p134_p3 = scmp.ne.s32.totalorder %s935_s16, %s931_s15  ;;  %p135_p4 = scmp.eq.s32.totalorder %s608_s20, 1 }
   0x8   : > { %s1009_s24 = scalar_select %p116_p1, %s939_s17, %s118_s22  }
   0x9   : > { %p1011_p5 = por %p129_p2, %p128_p0  ;;  %p1015_p6 = por %p135_p4, %p134_p3 }
   0xa   : > { %p611_p7 = scmp.ge.s32.totalorder %s943_s18, 1  ;;  %p175_p8 = scmp.lt.s32.totalorder %s943_s18, 3 }
   0xc   : > { %p176_p9 = pnand %p611_p7, %p175_p8 }
   0xd   : > { %v232_v0 = vld [vmem:[%s1165_s2] sm:$0xff] (!%p176_p9)  ;;  %v233_v1 = vld [vmem:[%s1165_s2 + $0x8] sm:$0xff] (!%p176_p9)  ;;  %v234_v2 = vld [vmem:[%s1165_s2 + $0x10] sm:$0xff] (!%p176_p9)  ;;  %p206_p10 = scmp.lt.s32.totalorder (!%p176_p9), %s994_s19, 1  ;;  %s203_s12 = sand.u32 (!%p176_p9), 1, %s935_s16  }
   0xe   : > { %179 = sbr.rel (%p176_p9) target bundleno = 593 (0x251), region = 36  ;;  %v766_v3 = vpack.c.bf16 (!%p176_p9), %v233_v1, %v232_v0  ;;  %v235_v4 = vld [vmem:[%s1165_s2 + $0x18] sm:$0xff] (!%p176_p9)  ;;  %v236_v6 = vld [vmem:[%s1165_s2 + $0x20] sm:$0xff] (!%p176_p9)  ;;  %v237_v7 = vld [vmem:[%s1165_s2 + $0x28] sm:$0xff] (!%p176_p9)  ;;  %s624_s20 = sshll.u32 (!%p176_p9), %s994_s19, 8 }
   0xf   : > { %v770_v5 = vpack.c.bf16 (!%p176_p9), %v235_v4, %v234_v2  ;;  %v774_v8 = vpack.c.bf16 (!%p176_p9), %v237_v7, %v236_v6  ;;  %v238_v9 = vld [vmem:[%s1165_s2 + $0x30] sm:$0xff] (!%p176_p9)  ;;  %v239_v10 = vld [vmem:[%s1165_s2 + $0x38] sm:$0xff] (!%p176_p9)  ;;  %v240_v13 = vld [vmem:[%s1165_s2 + $0x40] sm:$0xff] (!%p176_p9)  ;;  %s1116_s30 = scalar_lea.hbm (!%p176_p9), %s1167_s4, %s624_s20 }
  0x10   : > { %767 = vmatprep.subr.bf16.mxu0 (!%p176_p9), %v766_v3  ;;  %v778_v12 = vpack.c.bf16 (!%p176_p9), %v239_v10, %v238_v9  ;;  %v241_v14 = vld [vmem:[%s1165_s2 + $0x48] sm:$0xff] (!%p176_p9)  ;;  %v242_v16 = vld [vmem:[%s1165_s2 + $0x50] sm:$0xff] (!%p176_p9)  ;;  %v243_v17 = vld [vmem:[%s1165_s2 + $0x58] sm:$0xff] (!%p176_p9) }
  0x11   : > { %769 = vmatpush3.bf16.msra.mxu0 (!%p176_p9), %v766_v3  ;;  %v782_v15 = vpack.c.bf16 (!%p176_p9), %v241_v14, %v240_v13  ;;  %v786_v18 = vpack.c.bf16 (!%p176_p9), %v243_v17, %v242_v16  ;;  %v244_v19 = vld [vmem:[%s1165_s2 + $0x60] sm:$0xff] (!%p176_p9)  ;;  %v245_v20 = vld [vmem:[%s1165_s2 + $0x68] sm:$0xff] (!%p176_p9)  ;;  %v246_v22 = vld [vmem:[%s1165_s2 + $0x70] sm:$0xff] (!%p176_p9) }
  0x12   : > { %771 = vmatprep.subr.bf16.mxu0 (!%p176_p9), %v770_v5  ;;  %v790_v21 = vpack.c.bf16 (!%p176_p9), %v245_v20, %v244_v19  ;;  %v247_v23 = vld [vmem:[%s1165_s2 + $0x78] sm:$0xff] (!%p176_p9)  ;;  %v473_v3 = vld [vmem:[%s1166_s3 + $0x8] sm:$0xff] (!%p176_p9)  ;;  %v472_v6 = vld [vmem:[%s1166_s3] sm:$0xff] (!%p176_p9) }
  0x13   : > { %v794_v24 = vpack.c.bf16 (!%p176_p9), %v247_v23, %v246_v22 }
  0x15   : > { %s1041_s13 = scalar_select %p206_p10, %s994_s19, 1  ;;  %773 = vmatpush3.bf16.msra.mxu0 %v770_v5 }
  0x16   : > { %775 = vmatprep.subr.bf16.mxu0 %v774_v8  ;;  %s1122_s19 = scalar_lea.sflag [#allocation3], %s203_s12 }
  0x17   : > { %s622_s14 = sshll.u32 %s1041_s13, 7  ;;  %s623_s6 = sshll.u32 %s1041_s13, 4 }
  0x18   : > { %s1047_s23 = scalar_lea.vmem %s1163_s0, %s622_s14  ;;  %s1099_s9 = scalar_lea.vmem %s1164_s1, %s623_s6 }
  0x19   : > { %v216_v11 = vld [vmem:[%s1047_s23] sm:$0xff]  ;;  %777 = vmatpush3.bf16.msra.mxu0 %v774_v8  ;;  %v217_v25 = vld [vmem:[%s1047_s23 + $0x8] sm:$0xff]  ;;  %v218_v26 = vld [vmem:[%s1047_s23 + $0x10] sm:$0xff]  ;;  %s612_s14 = sshll.u32 %s203_s12, 4  ;;  %s945_s6 = smov [#allocation2]  }
  0x1a   : > { %707 = vmatprep.mubr.f32.mxu0 %v216_v11  ;;  %779 = vmatprep.subr.bf16.mxu0 %v778_v12  ;;  %v219_v27 = vld [vmem:[%s1047_s23 + $0x18] sm:$0xff]  ;;  %v220_v28 = vld [vmem:[%s1047_s23 + $0x20] sm:$0xff]  ;;  %v221_v29 = vld [vmem:[%s1047_s23 + $0x28] sm:$0xff]  ;;  %s205_s22 = scalar_lea.vmem [#allocation2], %s612_s14  ;;  %s885_s7 = sshll.u32 %s945_s6, 4  ;;  %s886_s7 = int_to_ptr.vmem [resolvable:$false] %s885_s7 }
  0x1b   : > { %v222_v30 = vld [vmem:[%s1047_s23 + $0x30] sm:$0xff]  ;;  %v223_v31 = vld [vmem:[%s1047_s23 + $0x38] sm:$0xff]  ;;  %v224_v32 = vld [vmem:[%s1047_s23 + $0x40] sm:$0xff]  ;;  %s534_s27 = sshll.u32 %s205_s22, 4  ;;  %s887_s8 = scalar_lea.vmem %s886_s7, 512  ;;  %s1118_s27 = int_to_ptr.vmem [resolvable:$true] %s534_s27 }
  0x1c   : > { %v225_v33 = vld [vmem:[%s1047_s23 + $0x48] sm:$0xff]  ;;  %v226_v34 = vld [vmem:[%s1047_s23 + $0x50] sm:$0xff]  ;;  %v227_v35 = vld [vmem:[%s1047_s23 + $0x58] sm:$0xff]  ;;  %s881_s5 = scalar_lea.vmem %s1118_s27, 256  ;;  %p888_p0 = scmp.lt.s32.totalorder %s1118_s27, %s886_s7 }
  0x1d   : > { %781 = vmatpush3.bf16.msra.mxu0 %v778_v12  ;;  %v228_v36 = vld [vmem:[%s1047_s23 + $0x60] sm:$0xff]  ;;  %v229_v37 = vld [vmem:[%s1047_s23 + $0x68] sm:$0xff]  ;;  %v230_v38 = vld [vmem:[%s1047_s23 + $0x70] sm:$0xff]  ;;  %p882_p11 = scmp.ne.s32.totalorder %s1118_s27, %s881_s5  ;;  %p889_p1 = scmp.lt.s32.totalorder %s887_s8, %s881_s5 }
  0x1e   : > { %783 = vmatprep.subr.bf16.mxu0 %v782_v15  ;;  %v231_v39 = vld [vmem:[%s1047_s23 + $0x78] sm:$0xff]  ;;  %v393_v40 = vld [vmem:[%s1099_s9] sm:$0xff]  ;;  %v394_v1 = vld [vmem:[%s1099_s9 + $0x8] sm:$0xff] }
  0x1f   : > { %763 = vmatprep.mubr.f32.mxu1 %v393_v40  ;;  %p883_p12 = pnand %p882_p11, %p1011_p5  ;;  %p890_p2 = por %p889_p1, %p888_p0 }
  0x21   : > { %785 = vmatpush3.bf16.msra.mxu0 %v782_v15  ;;  %p884_p13 = pneg %p883_p12 }
  0x22   : > { %787 = vmatprep.subr.bf16.mxu0 %v786_v18 }
  0x23   : > { %p891_p3 = pnand %p890_p2, %p884_p13 }
  0x25   : > { %789 = vmatpush3.bf16.msra.mxu0 %v786_v18 }
  0x26   : > { %791 = vmatprep.subr.bf16.mxu0 %v790_v21 }
  0x29   : > { %793 = vmatpush3.bf16.msra.mxu0 %v790_v21 }
  0x2a   : > { %795 = vmatprep.subr.bf16.mxu0 %v794_v24 }
  0x2d   : > { %797 = vmatpush3.bf16.msra.mxu0 %v794_v24 }
  0x30   : > { %708 = vmatmul.mubr.f32.vlgmr.msra.gmra.mrb[0].mxu0 %v217_v25 }
  0x31   : > { %710 = vmatprep.mubr.f32.mxu0 %v218_v26 }
  0x34   : > { %711 = vmatmul.mubr.f32.gmra.mrb[2].mxu0 %v219_v27 }
  0x35   : > { %713 = vmatprep.mubr.f32.mxu0 %v220_v28 }
  0x38   : > { %714 = vmatmul.mubr.f32.gmra.mrb[4].mxu0 %v221_v29 }
  0x39   : > { %716 = vmatprep.mubr.f32.mxu0 %v222_v30 }
  0x3c   : > { %717 = vmatmul.mubr.f32.gmra.mrb[6].mxu0 %v223_v31 }
  0x3d   : > { %719 = vmatprep.mubr.f32.mxu0 %v224_v32 }
  0x40   : > { %720 = vmatmul.mubr.f32.gmra.mrb[8].mxu0 %v225_v33 }
  0x41   : > { %722 = vmatprep.mubr.f32.mxu0 %v226_v34 }
  0x44   : > { %723 = vmatmul.mubr.f32.gmra.mrb[10].mxu0 %v227_v35 }
  0x45   : > { %725 = vmatprep.mubr.f32.mxu0 %v228_v36 }
  0x48   : > { %726 = vmatmul.mubr.f32.gmra.mrb[12].mxu0 %v229_v37 }
  0x49   : > { %728 = vmatprep.mubr.f32.mxu0 %v230_v38 }
  0x4c   : > { %729 = vmatmul.mubr.f32.gmra.mrb[14].mxu0 %v231_v39 }
 0x103   : > { %v709_v41 = vpop.f32.mrb[0].mxu0 }
 0x104   : > { %v314_v42 = vpop.f32.mrb[1].mxu0 }
 0x105   : > { %v798_v43 = vpack.c.bf16 %v709_v41, %v314_v42 }
 0x107   : > { %v712_v44 = vpop.f32.mrb[2].mxu0  ;;  %799 = vmatprep.subr.bf16.mxu1 %v798_v43 }
 0x108   : > { %v324_v45 = vpop.f32.mrb[3].mxu0  ;;  %801 = vmatpush3.bf16.msra.mxu1 %v798_v43 }
 0x109   : > { %v802_v46 = vpack.c.bf16 %v712_v44, %v324_v45 }
 0x10b   : > { %v715_v47 = vpop.f32.mrb[4].mxu0  ;;  %803 = vmatprep.subr.bf16.mxu1 %v802_v46 }
 0x10c   : > { %v334_v48 = vpop.f32.mrb[5].mxu0  ;;  %805 = vmatpush3.bf16.msra.mxu1 %v802_v46 }
 0x10d   : > { %v806_v49 = vpack.c.bf16 %v715_v47, %v334_v48 }
 0x10f   : > { %v718_v50 = vpop.f32.mrb[6].mxu0  ;;  %807 = vmatprep.subr.bf16.mxu1 %v806_v49 }
 0x110   : > { %v344_v51 = vpop.f32.mrb[7].mxu0  ;;  %809 = vmatpush3.bf16.msra.mxu1 %v806_v49 }
 0x111   : > { %v810_v52 = vpack.c.bf16 %v718_v50, %v344_v51 }
 0x113   : > { %v721_v53 = vpop.f32.mrb[8].mxu0  ;;  %811 = vmatprep.subr.bf16.mxu1 %v810_v52 }
 0x114   : > { %v354_v54 = vpop.f32.mrb[9].mxu0  ;;  %813 = vmatpush3.bf16.msra.mxu1 %v810_v52 }
 0x115   : > { %v814_v55 = vpack.c.bf16 %v721_v53, %v354_v54 }
 0x117   : > { %v724_v56 = vpop.f32.mrb[10].mxu0  ;;  %815 = vmatprep.subr.bf16.mxu1 %v814_v55 }
 0x118   : > { %v364_v57 = vpop.f32.mrb[11].mxu0  ;;  %817 = vmatpush3.bf16.msra.mxu1 %v814_v55 }
 0x119   : > { %v818_v58 = vpack.c.bf16 %v724_v56, %v364_v57 }
 0x11b   : > { %v727_v59 = vpop.f32.mrb[12].mxu0  ;;  %819 = vmatprep.subr.bf16.mxu1 %v818_v58 }
 0x11c   : > { %v374_v60 = vpop.f32.mrb[13].mxu0  ;;  %821 = vmatpush3.bf16.msra.mxu1 %v818_v58 }
 0x11d   : > { %v822_v61 = vpack.c.bf16 %v727_v59, %v374_v60 }
 0x11f   : > { %v730_v62 = vpop.f32.mrb[14].mxu0  ;;  %823 = vmatprep.subr.bf16.mxu1 %v822_v61 }
 0x120   : > { %v384_v63 = vpop.f32.mrb[15].mxu0  ;;  %825 = vmatpush3.bf16.msra.mxu1 %v822_v61 }
 0x121   : > { %v826_v0 = vpack.c.bf16 %v730_v62, %v384_v63 }
 0x123   : > { %827 = vmatprep.subr.bf16.mxu1 %v826_v0 }
 0x124   : > { %829 = vmatpush3.bf16.msra.mxu1 %v826_v0 }
 0x127   : > { %764 = vmatmul.mubr.f32.vlgmr.msra.gmra.mrb[0].mxu1 %v394_v1 }
 0x1fa   : > { %v765_v2 = vpop.f32.mrb[0].mxu1 }
 0x1fb   : > { %v471_v4 = vmul.f32 0.85, %v765_v2  ;;  %v461_v5 = vpop.f32.mrb[1].mxu1 }
 0x1fc   : > { %v470_v7 = vmul.f32 0.85, %v461_v5 }
 0x1fd   : > { %v475_v8 = vadd.f32 %v473_v3, %v471_v4 }
 0x1fe   : > { %v474_v9 = vadd.f32 %v472_v6, %v470_v7 }
 0x1ff   : > { %v477_v10 = vmax.f32 %v475_v8, 0.0 }
 0x200   : > { %v476_v11 = vmax.f32 %v474_v9, 0.0 }
 0x202   : > { %v478_v12 = vadd.f32 %v477_v10, %v476_v11 }
 0x204   : > { %v479_v13 = vrot.slane %v478_v12, 4 }
 0x206   : > { %v480_v14 = vadd.f32 %v479_v13, %v478_v12 }
 0x208   : > { %v481_v15 = vrot.slane %v480_v14, 2 }
 0x20a   : > { %v482_v16 = vadd.f32 %v481_v15, %v480_v14 }
 0x20c   : > { %v483_v17 = vrot.slane %v482_v16, 1 }
 0x20e   : > { %v484_v18 = vadd.f32 %v483_v17, %v482_v16 }
 0x210   : > { %v485_v19 = vmul.f32 0.0625, %v484_v18 }
 0x212   : > { %v486_v20 = vadd.f32 1e-06, %v485_v19 }
 0x214   : > { %871 = vrcp.f32 %v486_v20 }
 0x21e   : > { %v872_v21 = vpop.eup %871 }
 0x21f   : > { %v488_v22 = vmul.f32 %v872_v21, %v476_v11  ;;  %v489_v23 = vmul.f32 %v872_v21, %v477_v10 }
 0x221   : > { %v492_v24 = vmin.f32 %v488_v22, 20.0  ;;  %v493_v25 = vmin.f32 %v489_v23, 20.0  ;;  %vm490_vm1 = vcmp.gt.f32.partialorder %v488_v22, 20.0  ;;  %vm491_vm3 = vcmp.gt.f32.partialorder %v489_v23, 20.0 }
 0x223   : > { %v494_v26 = vmul.f32 1.442695, %v492_v24  ;;  %v496_v27 = vmul.f32 1.442695, %v493_v25 }
 0x225   : > { %873 = vpow2.f32 %v494_v26 }
 0x226   : > { %875 = vpow2.f32 %v496_v27 }
 0x22f   : > { %v874_v28 = vpop.eup %873 }
 0x230   : > { %v876_v29 = vpop.eup %875  ;;  %v498_v30 = vadd.f32 1.0, %v874_v28  ;;  %v501_v32 = vmul.f32 -0.5, %v874_v28  ;;  %v504_v35 = vand.u32 2147483647, %v874_v28 }
 0x231   : > { %v507_v31 = vadd.f32 1.0, %v876_v29  ;;  %v510_v33 = vmul.f32 -0.5, %v876_v29  ;;  %v513_v37 = vand.u32 2147483647, %v876_v29 }
 0x232   : > { %877 = vlog2.f32 %v498_v30  ;;  %v502_v34 = vadd.f32 1.0, %v501_v32  ;;  %vm505_vm0 = vcmp.lt.f32.partialorder %v504_v35, 0.0004427343 }
 0x233   : > { %879 = vlog2.f32 %v507_v31  ;;  %v511_v36 = vadd.f32 1.0, %v510_v33  ;;  %vm514_vm2 = vcmp.lt.f32.partialorder %v513_v37, 0.0004427343 }
 0x234   : > { %v503_v41 = vmul.f32 %v874_v28, %v502_v34 }
 0x235   : > { %v512_v43 = vmul.f32 %v876_v29, %v511_v36 }
 0x23c   : > { %v878_v38 = vpop.eup %877 }
 0x23d   : > { %v880_v39 = vpop.eup %879  ;;  %v500_v40 = vmul.f32 0.6931472, %v878_v38 }
 0x23e   : > { %v509_v42 = vmul.f32 0.6931472, %v880_v39 }
 0x23f   : > { %v506_v44 = vsel %vm505_vm0, %v503_v41, %v500_v40 }
 0x240   : > { %v516_v45 = vsel %vm490_vm1, %v488_v22, %v506_v44  ;;  %v515_v46 = vsel %vm514_vm2, %v512_v43, %v509_v42 }
 0x241   : > { %518 = vst [vmem:[%s205_s22] sm:$0xff] %v516_v45  ;;  %v517_v47 = vsel %vm491_vm3, %v489_v23, %v515_v46 }
 0x242   : > { %519 = vst [vmem:[%s205_s22 + $0x8] sm:$0xff] %v517_v47 }
 0x243   : > { %894 = shalt.err (!%p891_p3)
}
 0x244   : > { %s895_s9 = scalar_lea.hbm %s1116_s30, 256  ;;  %s899_s10 = scalar_lea.hbm %s1167_s4, 512 }
 0x245   : > { %p896_p4 = scmp.ne.s32.totalorder %s1116_s30, %s895_s9  ;;  %p900_p9 = scmp.lt.u32.totalorder %s1116_s30, %s1167_s4 }
 0x246   : > { %p901_p10 = scmp.lt.u32.totalorder %s899_s10, %s895_s9  ;;  %p903_p12 = scmp.lt.u32.totalorder %s895_s9, %s1116_s30 }
 0x247   : > { %p897_p7 = pnand %p896_p4, %p1011_p5 }
 0x248   : > { %p902_p11 = por %p901_p10, %p900_p9 }
 0x249   : > { %p898_p8 = pneg %p897_p7 }
 0x24a   : > { %p904_p13 = por %p903_p12, %p902_p11 }
 0x24c   : > { %p905_p0 = pnand %p904_p13, %p898_p8 }
 0x24e   : > { %908 = shalt.err (!%p905_p0)
}
 0x24f   : > { %s946_s14 = smov 128   ;;  %s947_s20 = smov 8  }
 0x250   : > { %830 = dma.vmem_to_hbm [thread:$0]  (%p1011_p5), %s1118_s27, 256, %s1116_s30, %s1122_s19, %s946_s14, %s946_s14, %s947_s20  }
 0x251 PF: > { %p836_p1 = scmp.ge.s32.totalorder %s943_s18, 2  ;;  %s549_s22 = sand.u32 1, %s931_s15  }
 0x252   : > { %s550_s28 = scalar_lea.sflag [#allocation3], %s549_s22 }
 0x253   : > { %p833_p2 = pnand %p836_p1, %p1015_p6 }
 0x255   : > { %926 = dma.done.wait (!%p833_p2), %s550_s28, 256  }
 0x256   : > { %928 = vsyncadd (!%p833_p2), %s550_s28, 4294967040  ;;  %p14_p3 = scmp.ge.s32.totalorder %s998_s21, 4   ;;  %s1170_s15 = smov %s935_s16 }
 0x257   : > { %s1171_s16 = smov %s939_s17  ;;  %s1172_s17 = smov %s1009_s24 }
 0x258   : > { %s1173_s18 = smov %s998_s21  ;;  %16 = sbr.rel (!%p14_p3) target bundleno = 3 (0x3), region = 74 }
 0x25f   :  { %555 = vsyncpa [#allocation3], 1 }
 0x260   :  { %557 = vsyncpa [#allocation3 + $0x1], 1 }

</bundles_post_ra>
